<compile_context>
chip_gen: v5e
topology: v5e:2x2
jax: 0.10.0
libtpu: 0.0.40
codegen_flags: <defaults>
</compile_context>

<pallas_src>
import functools

import jax
import jax.numpy as jnp
from jax import lax
from jax.experimental import pallas as pl
from jax.experimental.pallas import tpu as pltpu


def _ce_label_smooth_kernel(logits_ref, targets_ref, out_ref, acc_ref, *,
                            steps: int, block_rows: int, n_rows: int,
                            needs_mask: bool):
    p = pl.program_id(0)          # shard (parallel across TensorCores)
    i = pl.program_id(1)          # row-tile step within the shard (reduction axis)

    @pl.when(i == 0)
    def _():
        acc_ref[...] = jnp.zeros_like(acc_ref)

    x = logits_ref[...]                               # (TM, Cp) native dtype (bf16/f32)
    tgt = targets_ref[...]                            # (TM, 1) int32

    # Row max + target-logit select on the *native-dtype* tile (both exact in bf16).
    m = jnp.max(x, axis=1, keepdims=True)                                    # (TM, 1)
    col = lax.broadcasted_iota(jnp.int32, x.shape, 1)                        # (TM, Cp)
    x_t = jnp.sum(jnp.where(col == tgt, x, jnp.zeros((), x.dtype)),
                  axis=1, keepdims=True).astype(jnp.float32)                 # (TM, 1)

    # Single widened pass: logsumexp along classes.  (The second log_softmax inside
    # nn.CrossEntropyLoss is mathematically the identity, so per-row nll = lse - x[target].)
    m32 = m.astype(jnp.float32)
    s = jnp.sum(jnp.exp(x.astype(jnp.float32) - m32), axis=1, keepdims=True)  # (TM, 1)
    nll = jnp.log(s) + m32 - x_t                                              # (TM, 1)

    if needs_mask:
        # Only the boundary (or clamped duplicate) tile pays for the row mask.
        row_start = (p * steps + i) * block_rows

        @pl.when(row_start + block_rows <= n_rows)
        def _():
            acc_ref[...] += jnp.sum(nll, keepdims=True)

        @pl.when(row_start + block_rows > n_rows)
        def _():
            row = row_start + lax.broadcasted_iota(jnp.int32, nll.shape, 0)
            acc_ref[...] += jnp.sum(jnp.where(row < n_rows, nll, 0.0), keepdims=True)
    else:
        acc_ref[...] += jnp.sum(nll, keepdims=True)

    @pl.when(i == pl.num_programs(1) - 1)
    def _():
        out_ref[...] = acc_ref[...]          # raw partial sum; scaled in the wrapper


def cross_entropy_label_smooth(logits: jax.Array, targets: jax.Array,
                               num_classes: int, epsilon: float = 0.1,
                               block_rows: int | None = None) -> jax.Array:
    """logits: (N, C) float32/bfloat16; targets: (N,) int class indices. Returns scalar f32."""
    n, c = logits.shape
    assert c == num_classes

    # Lane-dense class dim: pad ragged large C to a multiple of 128 with a big negative
    # constant (exp -> 0; targets < C so the compare never hits padded columns).  Small C
    # (< 128) keeps the full-extent-block exemption and avoids extra HBM traffic.
    x = logits
    c_pad = c
    if c > 128 and c % 128 != 0:
        c_pad = ((c + 127) // 128) * 128
        pad = jnp.full((n, c_pad - c), -1e9, dtype=logits.dtype)
        x = jnp.concatenate([logits, pad], axis=1)

    targets2d = targets.astype(jnp.int32).reshape(n, 1)
    itemsize = jnp.dtype(x.dtype).itemsize

    # Byte-based row tiling: ~2 MiB logits tile (multiple of 8 rows) keeps the
    # double-buffered DMA near the HBM roofline without over-allocating VMEM.
    if block_rows is None:
        tm = (2 * 1024 * 1024) // (c_pad * itemsize)
    else:
        tm = block_rows
    if n < 8:
        tm = n                                   # full-extent block (exempt from 8-row rule)
    else:
        tm = max(8, (min(int(tm), n) // 8) * 8)

    num_blocks = pl.cdiv(n, tm)                  # total row tiles
    # Leading parallel axis shards the row tiles across TensorCores (2 on v7x; a harmless
    # serial split elsewhere).  Each shard produces one partial sum.
    num_shards = 2 if num_blocks >= 2 else 1
    steps = pl.cdiv(num_blocks, num_shards)
    padded_blocks = num_shards * steps
    needs_mask = (n % tm != 0) or (padded_blocks != num_blocks)

    if padded_blocks == num_blocks:
        def row_map(p, i):
            return (p * steps + i, 0)
    else:
        # The grid is rectangular: clamp over-hanging block indices to the last real block;
        # those rows are fully masked out in the kernel and contribute zero.
        def row_map(p, i):
            return (jnp.minimum(p * steps + i, num_blocks - 1), 0)

    # 2 pipeline buffers for the logits tile + generous budget for the f32 intermediates of
    # the exp pass, clamped to stay inside every generation's scoped VMEM (v7x: 64 MiB phys).
    tile_bytes = tm * c_pad * itemsize
    vmem_limit = int(min(48 * 1024 * 1024,
                         max(24 * 1024 * 1024,
                             2 * tile_bytes + 4 * tm * c_pad * 4 + (2 << 20))))

    kernel = functools.partial(
        _ce_label_smooth_kernel,
        steps=steps, block_rows=tm, n_rows=n, needs_mask=needs_mask)

    partials = pl.pallas_call(
        kernel,
        grid=(num_shards, steps),
        out_shape=jax.ShapeDtypeStruct((num_shards, 1), jnp.float32),
        in_specs=[
            pl.BlockSpec((tm, c_pad), row_map),   # logits tile (pipelined VMEM)
            pl.BlockSpec((tm, 1), row_map),       # per-row targets (tiny, same map)
        ],
        # Per-shard output block is constant along the reduction axis => resident, written once.
        out_specs=pl.BlockSpec((1, 1), lambda p, i: (p, 0)),
        scratch_shapes=[pltpu.VMEM((1, 1), jnp.float32)],
        compiler_params=pltpu.CompilerParams(
            dimension_semantics=("parallel", "arbitrary"),
            vmem_limit_bytes=vmem_limit),
    )(x, targets2d)

    base_mul = 1.0 - epsilon + epsilon / num_classes
    return jnp.sum(partials) * jnp.float32(base_mul / n)


def _reference(logits, targets, num_classes, epsilon=0.1):
    """Exact PyTorch semantics: log_softmax followed by CrossEntropyLoss (double log_softmax)."""
    x = logits.astype(jnp.float32)
    lp1 = jax.nn.log_softmax(x, axis=1)
    lp2 = jax.nn.log_softmax(lp1, axis=1)
    nll = -jnp.take_along_axis(lp2, targets[:, None].astype(jnp.int32), axis=1)[:, 0]
    base = jnp.mean(nll)
    return (1.0 - epsilon + epsilon / num_classes) * base


if __name__ == "__main__":
    eps = 0.1
    key = jax.random.PRNGKey(0)
    k1, k2, k3, k4, k5, k6 = jax.random.split(key, 6)

    # Test 1: single-block path (1 shard), f32.
    N1, C1 = 8, 16
    logits1 = jax.random.normal(k1, (N1, C1), dtype=jnp.float32) * 3.0
    targets1 = jax.random.randint(k2, (N1,), 0, C1, dtype=jnp.int32)
    loss1 = jax.block_until_ready(
        cross_entropy_label_smooth(logits1, targets1, C1, eps))
    ref1 = _reference(logits1, targets1, C1, eps)
    assert jnp.allclose(loss1, ref1, atol=1e-5, rtol=1e-5), (loss1, ref1)

    # Test 2: 2-shard parallel grid with a partial last tile (row-mask path), f32.
    N2, C2 = 13, 16
    logits2 = jax.random.normal(k3, (N2, C2), dtype=jnp.float32) * 3.0
    targets2 = jax.random.randint(k4, (N2,), 0, C2, dtype=jnp.int32)
    loss2 = jax.block_until_ready(
        cross_entropy_label_smooth(logits2, targets2, C2, eps))
    ref2 = _reference(logits2, targets2, C2, eps)
    assert jnp.allclose(loss2, ref2, atol=1e-5, rtol=1e-5), (loss2, ref2)

    # Test 3: odd number of row tiles -> clamped duplicate block on the second shard.
    N3, C3 = 20, 16
    logits3 = jax.random.normal(k5, (N3, C3), dtype=jnp.float32) * 3.0
    targets3 = jax.random.randint(k6, (N3,), 0, C3, dtype=jnp.int32)
    loss3 = jax.block_until_ready(
        cross_entropy_label_smooth(logits3, targets3, C3, eps, block_rows=8))
    ref3 = _reference(logits3, targets3, C3, eps)
    assert jnp.allclose(loss3, ref3, atol=1e-5, rtol=1e-5), (loss3, ref3)

    # Test 4: bf16 ingest (no wrapper up-cast) + ragged class dim > 128 (pad-to-128 path).
    N4, C4 = 24, 200
    logits4 = (jax.random.normal(k1, (N4, C4), dtype=jnp.float32) * 3.0).astype(jnp.bfloat16)
    targets4 = jax.random.randint(k2, (N4,), 0, C4, dtype=jnp.int32)
    loss4 = jax.block_until_ready(
        cross_entropy_label_smooth(logits4, targets4, C4, eps))
    ref4 = _reference(logits4.astype(jnp.float32), targets4, C4, eps)
    assert jnp.allclose(loss4, ref4, atol=1e-4, rtol=1e-4), (loss4, ref4)

    print("KERNEL_OK")
</pallas_src>

<mosaic_0001>
module attributes {stable_mosaic.version = 11 : i64} {
  func.func @_ce_label_smooth_kernel(%arg0: i32, %arg1: i32, %arg2: memref<8x16xf32, #tpu.memory_space<vmem>>, %arg3: memref<8x1xi32, #tpu.memory_space<vmem>>, %arg4: memref<1x1xf32, #tpu.memory_space<vmem>>, %arg5: memref<1x1xf32, #tpu.memory_space<vmem>>) attributes {dimension_semantics = [#tpu.dimension_semantics<parallel>, #tpu.dimension_semantics<arbitrary>], iteration_bounds = array<i64: 1, 1>, scalar_prefetch = 0 : i64, scratch_operands = 1 : i64, tpu.core_type = #tpu.core_type<tc>, window_params = [{transform_indices = @transform_0, window_bounds = array<i64: 8, 16>}, {transform_indices = @transform_1, window_bounds = array<i64: 8, 1>}, {transform_indices = @transform_2, window_bounds = array<i64: 1, 1>}]} {
    %c0_i32 = arith.constant 0 : i32
    %0 = arith.cmpi eq, %arg1, %c0_i32 : i32
    %1 = arith.extui %0 : i1 to i32
    %c0_i32_0 = arith.constant 0 : i32
    %2 = arith.cmpi ne, %1, %c0_i32_0 : i32
    scf.if %2 {
      %cst_14 = arith.constant 0.000000e+00 : f32
      %33 = vector.broadcast %cst_14 : f32 to vector<1x1xf32>
      %c0_15 = arith.constant 0 : index
      %c0_16 = arith.constant 0 : index
      %34 = vector.load %arg5[%c0_15, %c0_16] : memref<1x1xf32, #tpu.memory_space<vmem>>, vector<1x1xf32>
      tpu.vector_store %arg5[%c0_15, %c0_16], %33 {strides = array<i32>} : memref<1x1xf32, #tpu.memory_space<vmem>>, vector<1x1xf32>,
    } else {
    }
    %c0 = arith.constant 0 : index
    %c0_1 = arith.constant 0 : index
    %3 = vector.load %arg2[%c0, %c0_1] : memref<8x16xf32, #tpu.memory_space<vmem>>, vector<8x16xf32>
    %c0_2 = arith.constant 0 : index
    %c0_3 = arith.constant 0 : index
    %4 = vector.load %arg3[%c0_2, %c0_3] : memref<8x1xi32, #tpu.memory_space<vmem>>, vector<8x1xi32>
    %cst = arith.constant dense<0xFF800000> : vector<8xf32>
    %5 = vector.multi_reduction <maximumf>, %3, %cst [1] : vector<8x16xf32> to vector<8xf32>
    %6 = vector.shape_cast %5 : vector<8xf32> to vector<8x1xf32>
    %7 = tpu.iota {dimensions = array<i32: 1>} : vector<8x16xi32>
    %8 = vector.broadcast %4 : vector<8x1xi32> to vector<8x16xi32>
    %9 = arith.cmpi eq, %7, %8 : vector<8x16xi32>
    %cst_4 = arith.constant 0.000000e+00 : f32
    %10 = vector.broadcast %cst_4 : f32 to vector<8x16xf32>
    %11 = arith.select %9, %3, %10 : vector<8x16xi1>, vector<8x16xf32>
    %cst_5 = arith.constant dense<0.000000e+00> : vector<8xf32>
    %12 = vector.multi_reduction <add>, %11, %cst_5 [1] : vector<8x16xf32> to vector<8xf32>
    %13 = vector.shape_cast %12 : vector<8xf32> to vector<8x1xf32>
    %14 = vector.broadcast %6 : vector<8x1xf32> to vector<8x16xf32>
    %15 = arith.subf %3, %14 : vector<8x16xf32>
    %16 = math.exp %15 : vector<8x16xf32>
    %cst_6 = arith.constant dense<0.000000e+00> : vector<8xf32>
    %17 = vector.multi_reduction <add>, %16, %cst_6 [1] : vector<8x16xf32> to vector<8xf32>
    %18 = vector.shape_cast %17 : vector<8xf32> to vector<8x1xf32>
    %19 = math.log %18 : vector<8x1xf32>
    %20 = arith.addf %19, %6 : vector<8x1xf32>
    %21 = arith.subf %20, %13 : vector<8x1xf32>
    %c0_7 = arith.constant 0 : index
    %c0_8 = arith.constant 0 : index
    %22 = vector.load %arg5[%c0_7, %c0_8] : memref<1x1xf32, #tpu.memory_space<vmem>>, vector<1x1xf32>
    %23 = vector.shape_cast %21 : vector<8x1xf32> to vector<1x8x1xf32>
    %cst_9 = arith.constant dense<0.000000e+00> : vector<1xf32>
    %24 = vector.multi_reduction <add>, %23, %cst_9 [1, 2] : vector<1x8x1xf32> to vector<1xf32>
    %25 = vector.shape_cast %24 : vector<1xf32> to vector<1x1x1xf32>
    %26 = vector.extract %25[0, 0, 0] : f32 from vector<1x1x1xf32>
    %27 = vector.broadcast %26 : f32 to vector<1x1xf32>
    %28 = arith.addf %22, %27 : vector<1x1xf32>
    %c0_10 = arith.constant 0 : index
    %c0_11 = arith.constant 0 : index
    %29 = vector.load %arg5[%c0_10, %c0_11] : memref<1x1xf32, #tpu.memory_space<vmem>>, vector<1x1xf32>
    tpu.vector_store %arg5[%c0_10, %c0_11], %28 {strides = array<i32>} : memref<1x1xf32, #tpu.memory_space<vmem>>, vector<1x1xf32>,
    %c0_i32_12 = arith.constant 0 : i32
    %30 = arith.cmpi eq, %arg1, %c0_i32_12 : i32
    %31 = arith.extui %30 : i1 to i32
    %c0_i32_13 = arith.constant 0 : i32
    %32 = arith.cmpi ne, %31, %c0_i32_13 : i32
    scf.if %32 {
      %c0_14 = arith.constant 0 : index
      %c0_15 = arith.constant 0 : index
      %33 = vector.load %arg5[%c0_14, %c0_15] : memref<1x1xf32, #tpu.memory_space<vmem>>, vector<1x1xf32>
      %c0_16 = arith.constant 0 : index
      %c0_17 = arith.constant 0 : index
      %34 = vector.load %arg4[%c0_16, %c0_17] : memref<1x1xf32, #tpu.memory_space<vmem>>, vector<1x1xf32>
      tpu.vector_store %arg4[%c0_16, %c0_17], %33 {strides = array<i32>} : memref<1x1xf32, #tpu.memory_space<vmem>>, vector<1x1xf32>,
    } else {
    }
    return
  }
  func.func @transform_0(%arg0: i32, %arg1: i32) -> (i32, i32) {
    %c1_i32 = arith.constant 1 : i32
    %0 = arith.muli %arg0, %c1_i32 : i32
    %1 = arith.addi %0, %arg1 : i32
    %c0_i32 = arith.constant 0 : i32
    %c0_i32_0 = arith.constant 0 : i32
    return %1, %c0_i32 : i32, i32
  }
  func.func @transform_1(%arg0: i32, %arg1: i32) -> (i32, i32) {
    %c1_i32 = arith.constant 1 : i32
    %0 = arith.muli %arg0, %c1_i32 : i32
    %1 = arith.addi %0, %arg1 : i32
    %c0_i32 = arith.constant 0 : i32
    %c0_i32_0 = arith.constant 0 : i32
    return %1, %c0_i32 : i32, i32
  }
  func.func @transform_2(%arg0: i32, %arg1: i32) -> (i32, i32) {
    %c0_i32 = arith.constant 0 : i32
    %c0_i32_0 = arith.constant 0 : i32
    return %arg0, %c0_i32 : i32, i32
  }
}

</mosaic_0001>

<bundles_post_ra>
// kernel: tpu_custom_call.1
= control target key start
LH: loop header
LB: loop body
LE: loop exit
PB: predicated region body
PF: predicated region fallthrough
CT: control target
= control target key end

     0   :  { %vm54_vm0 = vcmask 130048   ;;  %s196_s0 = inlined_call_operand.vmem [shape: f32[8,16], index: 0, kind: input, shape index: {}]   ;;  %s197_s1 = inlined_call_operand.vmem [shape: s32[8,1], index: 1, kind: input, shape index: {}]   ;;  %s198_s2 = inlined_call_operand.hbm [shape: f32[1,1], index: 2, kind: output, shape index: {}]  }
   0x1   :  { %v52_v0 = vld [vmem:[%s196_s0] sm:$0xff] }
   0x2   :  { %7 = vsyncpa [#allocation4], 0  ;;  %v55_v1 = vsel %vm54_vm0, %v52_v0, -inf  ;;  %v163_v2 = vmov 0   ;;  %v53_v3 = vld [vmem:[%s197_s1] sm:$0xff]  ;;  %v58_v9 = vlaneseq  ;;  %vm79_vm2 = vcmask 7168  }
   0x3   :  { %132 = vset.pattern.permute.xlu0 %v163_v2  ;;  %vm50_vm3 = vcmask 0   ;;  %v164_v21 = vmov 0.0   ;;  %s165_s1 = smov [#allocation3]   ;;  %s106_s16 = sshll.u32 %s198_s2, 4  ;;  %s107_s16 = int_to_ptr.hbm [resolvable:$true] %s106_s16 }
   0x4   :  { %56 = vmax.xlane.f32.xlu0 %v55_v1  ;;  %v59_v10 = vand.u32 127, %v58_v9  ;;  %51 = vst.msk [vmem:[#allocation2] sm:$0x1] %vm50_vm3, %v164_v21  ;;  %s104_s13 = sshll.u32 %s165_s1, 4  ;;  %s105_s13 = int_to_ptr.vmem [resolvable:$true] %s104_s13 }
   0xb   :  { %v78_v29 = vld [vmem:[#allocation2] sm:$0x1] }
  0x18   :  { %61 = vperm.xlu0 %132, %v53_v3  }
  0x77   :  { %v57_v4 = vpop.xlane.xlu0 %56 }
  0x78   :  { %v68_v5 = vsub.f32 %v52_v0, %v57_v4 }
  0x7a   :  { %v69_v6 = vmul.f32 1.442695, %v68_v5 }
  0x7c   :  { %133 = vpow2.f32 %v69_v6 }
  0x82   :  { %v134_v7 = vpop.eup %133 }
  0x83   :  { %v71_v8 = vsel %vm54_vm0, %v134_v7, 0.0 }
  0x84   :  { %72 = vadd.xlane.f32.xlu1 %v71_v8 }
  0x8a   :  { %v62_v11 = vpop.permute.xlu0 %61 }
  0x8b   :  { %vm63_vm1 = vcmp.eq.s32.totalorder %v59_v10, %v62_v11 }
  0x8c   :  { %v64_v12 = vsel %vm63_vm1, %v52_v0, 0.0 }
  0x8d   :  { %v65_v13 = vsel %vm54_vm0, %v64_v12, 0.0 }
  0x8e   :  { %66 = vadd.xlane.f32.xlu1 %v65_v13 }
  0xf7   :  { %v73_v14 = vpop.xlane.xlu1 %72 }
  0xf8   :  { %135 = vlog2.f32 %v73_v14 }
  0xfe   :  { %v136_v15 = vpop.eup %135 }
  0xff   :  { %v75_v16 = vmul.f32 0.6931472, %v136_v15 }
 0x101   :  { %v76_v17 = vadd.f32 %v75_v16, %v57_v4  ;;  %v67_v18 = vpop.xlane.xlu1 %66 }
 0x103   :  { %v77_v19 = vsub.f32 %v76_v17, %v67_v18 }
 0x105   :  { %v80_v20 = vsel %vm79_vm2, %v77_v19, 0.0 }
 0x106   :  { %81 = vadd.xlane.f32.xlu2 %v80_v20 }
 0x179   :  { %v82_v22 = vpop.xlane.xlu2 %81 }
 0x17a   :  { %v83_v23 = vrot.slane %v82_v22, 4 }
 0x17c   :  { %v84_v24 = vadd.f32 %v83_v23, %v82_v22 }
 0x17e   :  { %v85_v25 = vrot.slane %v84_v24, 2 }
 0x180   :  { %v86_v26 = vadd.f32 %v85_v25, %v84_v24 }
 0x182   :  { %v87_v27 = vrot.slane %v86_v26, 1 }
 0x184   :  { %v88_v28 = vadd.f32 %v87_v27, %v86_v26 }
 0x186   :  { %127 = vpush %v88_v28 }
 0x1b7   :  { %s128_s0 = spop %127 }
 0x1b8   :  { %v90_v30 = vstv %s128_s0 }
 0x1b9   :  { %v91_v31 = vadd.f32 %v90_v30, %v78_v29 }
 0x1bb   :  { %93 = vst.msk [vmem:[#allocation2] sm:$0x1] %vm50_vm3, %v91_v31 }
 0x1c2   :  { %v97_v32 = vld [vmem:[#allocation2] sm:$0x1] }
 0x1c3   :  { %98 = vst.msk [vmem:[#allocation3] sm:$0x1] %vm50_vm3, %v97_v32 }
 0x1c4   :  { %109 = dma.vmem_to_hbm [thread:$0]  %s105_s13, 16, %s107_s16, [#allocation4]  }
 0x1c5   :  { %161 = dma.done.wait [#allocation4], 16  }
 0x1c6   :  { %162 = vsyncadd [#allocation4], 4294967280 }
 0x1c7   :  { %114 = vsyncpa [#allocation4], 1 }

</bundles_post_ra>
